<compile_context>
chip_gen: v7x
topology: tpu7x:2x2x1
jax: 0.10.0
libtpu: 0.0.40
codegen_flags: <defaults>
</compile_context>

<pallas_src>
import jax
import jax.numpy as jnp
from jax.experimental import pallas as pl
from jax.experimental.pallas import tpu as pltpu


IN_DIM = 784        # 1 * 28 * 28
HID = 200           # logical hidden width (matches nn.Linear(784, 200))
CLS = 10            # logical num_classes
HID_P = 256         # hidden padded to MXU/lane width
CLS_P = 128         # logits padded to one full lane row
MAX_TILE_B = 1024   # rows per grid step (double-buffered f32 tile ~6.3 MiB, fits all chips)


def _dnn_kernel(x_ref, w1_ref, b1_ref, w2_ref, b2_ref, w3_ref, b3_ref, o_ref):
    # Cast x to bf16 in-kernel (input arrives f32 straight from HBM, no wrapper pre-pass).
    x = x_ref[...].astype(jnp.bfloat16)
    # fc1 + ReLU   (bf16 MXU inputs, f32 accumulation, f32 bias/ReLU)
    h1 = jnp.dot(x, w1_ref[...], preferred_element_type=jnp.float32)
    h1 = jnp.maximum(h1 + b1_ref[...], 0.0)
    # fc2 + ReLU
    h2 = jnp.dot(h1.astype(jnp.bfloat16), w2_ref[...],
                 preferred_element_type=jnp.float32)
    h2 = jnp.maximum(h2 + b2_ref[...], 0.0)
    # fc (logits, no activation); lane-dense [tile_b, 128] store
    out = jnp.dot(h2.astype(jnp.bfloat16), w3_ref[...],
                  preferred_element_type=jnp.float32)
    o_ref[...] = (out + b3_ref[...]).astype(o_ref.dtype)


def _round_up(n, m):
    return ((n + m - 1) // m) * m


def _cdiv(a, b):
    return -(-a // b)


def _pad2(a, rows, cols, dtype):
    r, c = a.shape
    return jnp.pad(a, ((0, rows - r), (0, cols - c))).astype(dtype)


def prepare_params(params):
    """One-time preparation: zero-pad to lane/MXU-aligned shapes, cast weights to bf16.

    Padding columns/rows are exact zeros, so sliced outputs are bit-identical to unpadded math.
    Call once and reuse the result; this keeps the 6-7 pad/convert ops out of the forward path.
    """
    return {
        "w1": _pad2(params["w1"], IN_DIM, HID_P, jnp.bfloat16),
        "b1": _pad2(params["b1"], 1, HID_P, jnp.float32),
        "w2": _pad2(params["w2"], HID_P, HID_P, jnp.bfloat16),
        "b2": _pad2(params["b2"], 1, HID_P, jnp.float32),
        "w3": _pad2(params["w3"], HID_P, CLS_P, jnp.bfloat16),
        "b3": _pad2(params["b3"], 1, CLS_P, jnp.float32),
    }


def _choose_tiling(B):
    """Pick (tile_b, n_tiles, b_pad) minimizing over-padding; force an even multi-step grid
    for large batches so v7x megacore can shard the parallel batch axis across both TCs."""
    n_tiles = max(1, _cdiv(B, MAX_TILE_B))
    if B >= 256:
        n_tiles = max(2, n_tiles)
        if n_tiles % 2:
            n_tiles += 1
    tile_b = _round_up(_cdiv(B, n_tiles), 8)   # sublane-full rows per step
    return tile_b, n_tiles, n_tiles * tile_b


@jax.jit
def dnn_forward(x, prepared):
    """x: [B, 1, 28, 28] or [B, 784] float32; prepared: output of prepare_params()."""
    B = x.shape[0]
    x2d = x.reshape(B, -1)                     # free view; stays f32, cast happens in-kernel

    tile_b, n_tiles, b_pad = _choose_tiling(B)
    if b_pad != B:
        # Minimal padding (< tile_b rows total); padded rows are zero and sliced away below.
        x2d = jnp.pad(x2d, ((0, b_pad - B), (0, 0)))

    def resident(shape):
        # Constant block index across the grid -> single buffer, never re-DMA'd.
        return pl.BlockSpec(shape, lambda i: (0, 0), pipeline_mode=pl.Buffered(1))

    out_padded = pl.pallas_call(
        _dnn_kernel,
        out_shape=jax.ShapeDtypeStruct((b_pad, CLS_P), jnp.float32),
        grid=(n_tiles,),
        in_specs=[
            pl.BlockSpec((tile_b, IN_DIM), lambda i: (i, 0)),   # x tile, double-buffered
            resident((IN_DIM, HID_P)),                          # w1
            resident((1, HID_P)),                               # b1
            resident((HID_P, HID_P)),                           # w2
            resident((1, HID_P)),                               # b2
            resident((HID_P, CLS_P)),                           # w3
            resident((1, CLS_P)),                               # b3
        ],
        out_specs=pl.BlockSpec((tile_b, CLS_P), lambda i: (i, 0)),
        compiler_params=pltpu.CompilerParams(
            dimension_semantics=("parallel",),   # megacore batch sharding on v7x
            vmem_limit_bytes=32 * 1024 * 1024,   # peak usage ~9 MiB at tile_b=1024, f32 x
        ),
    )(x2d, prepared["w1"], prepared["b1"], prepared["w2"], prepared["b2"],
      prepared["w3"], prepared["b3"])

    return out_padded[:B, :CLS]


def init_params(key, input_dim=IN_DIM, hidden=HID, num_classes=CLS):
    """Deterministic init mimicking nn.Linear default (uniform(-1/sqrt(fan_in), +1/sqrt(fan_in)))."""
    ks = jax.random.split(key, 6)

    def linear(kw, kb, fan_in, fan_out):
        bound = 1.0 / jnp.sqrt(fan_in)
        w = jax.random.uniform(kw, (fan_in, fan_out), jnp.float32, -bound, bound)
        b = jax.random.uniform(kb, (1, fan_out), jnp.float32, -bound, bound)
        return w, b

    w1, b1 = linear(ks[0], ks[1], input_dim, hidden)
    w2, b2 = linear(ks[2], ks[3], hidden, hidden)
    w3, b3 = linear(ks[4], ks[5], hidden, num_classes)
    return {"w1": w1, "b1": b1, "w2": w2, "b2": b2, "w3": w3, "b3": b3}


def _reference(x, p):
    """Pure-JAX reference using the same dtype recipe as the kernel (bf16 dots, f32 accum).

    Note: intentionally bf16-in / bf16-weight, so it is NOT numerically identical to a pure-f32
    PyTorch forward (~1e-2 relative); argmax/softmax behavior is unaffected.
    """
    B = x.shape[0]
    h = x.reshape(B, -1).astype(jnp.bfloat16)
    h = jnp.maximum(jnp.dot(h, p["w1"].astype(jnp.bfloat16),
                            preferred_element_type=jnp.float32) + p["b1"], 0.0)
    h = jnp.maximum(jnp.dot(h.astype(jnp.bfloat16), p["w2"].astype(jnp.bfloat16),
                            preferred_element_type=jnp.float32) + p["b2"], 0.0)
    return jnp.dot(h.astype(jnp.bfloat16), p["w3"].astype(jnp.bfloat16),
                   preferred_element_type=jnp.float32) + p["b3"]


if __name__ == "__main__":
    key = jax.random.PRNGKey(0)
    k_x, k_p = jax.random.split(key)

    # Small-batch MNIST-shaped input (NCHW like PyTorch): [2, 1, 28, 28]
    x = jax.random.normal(k_x, (2, 1, 28, 28), dtype=jnp.float32)
    params = init_params(k_p)
    prepared = prepare_params(params)          # one-time pad + bf16 cast, outside forward path

    out = dnn_forward(x, prepared)
    out = jax.block_until_ready(out)

    ref = _reference(x, params)
    assert out.shape == (2, 10), out.shape
    assert jnp.allclose(out, ref, atol=5e-3, rtol=5e-3), "mismatch vs pure-JAX reference"

    print("KERNEL_OK")
</pallas_src>

<mosaic_0001>
module attributes {stable_mosaic.version = 11 : i64} {
  func.func @_dnn_kernel(%arg0: i32, %arg1: memref<8x784xf32, #tpu.memory_space<vmem>>, %arg2: memref<784x256xbf16, #tpu.memory_space<vmem>>, %arg3: memref<1x256xf32, #tpu.memory_space<vmem>>, %arg4: memref<256x256xbf16, #tpu.memory_space<vmem>>, %arg5: memref<1x256xf32, #tpu.memory_space<vmem>>, %arg6: memref<256x128xbf16, #tpu.memory_space<vmem>>, %arg7: memref<1x128xf32, #tpu.memory_space<vmem>>, %arg8: memref<8x128xf32, #tpu.memory_space<vmem>>) attributes {dimension_semantics = [#tpu.dimension_semantics<parallel>], iteration_bounds = array<i64: 1>, scalar_prefetch = 0 : i64, scratch_operands = 0 : i64, tpu.core_type = #tpu.core_type<tc>, window_params = [{transform_indices = @transform_0, window_bounds = array<i64: 8, 784>}, {pipeline_mode = #tpu.pipeline_mode<synchronous>, transform_indices = @transform_1, window_bounds = array<i64: 784, 256>}, {pipeline_mode = #tpu.pipeline_mode<synchronous>, transform_indices = @transform_2, window_bounds = array<i64: 1, 256>}, {pipeline_mode = #tpu.pipeline_mode<synchronous>, transform_indices = @transform_3, window_bounds = array<i64: 256, 256>}, {pipeline_mode = #tpu.pipeline_mode<synchronous>, transform_indices = @transform_4, window_bounds = array<i64: 1, 256>}, {pipeline_mode = #tpu.pipeline_mode<synchronous>, transform_indices = @transform_5, window_bounds = array<i64: 256, 128>}, {pipeline_mode = #tpu.pipeline_mode<synchronous>, transform_indices = @transform_6, window_bounds = array<i64: 1, 128>}, {transform_indices = @transform_7, window_bounds = array<i64: 8, 128>}]} {
    %c0 = arith.constant 0 : index
    %c0_0 = arith.constant 0 : index
    %0 = vector.load %arg1[%c0, %c0_0] : memref<8x784xf32, #tpu.memory_space<vmem>>, vector<8x784xf32>
    %1 = arith.truncf %0 : vector<8x784xf32> to vector<8x784xbf16>
    %c0_1 = arith.constant 0 : index
    %c0_2 = arith.constant 0 : index
    %2 = vector.load %arg2[%c0_1, %c0_2] : memref<784x256xbf16, #tpu.memory_space<vmem>>, vector<784x256xbf16>
    %cst = arith.constant dense<0.000000e+00> : vector<8x256xf32>
    %3 = tpu.matmul %1, %2, %cst {dimension_numbers = #tpu.dot_dimension_numbers<[1], [0], [0], [1], [0, 0, 1, 1], [], []>} : vector<8x784xbf16>, vector<784x256xbf16>, vector<8x256xf32> -> vector<8x256xf32>
    %c0_3 = arith.constant 0 : index
    %c0_4 = arith.constant 0 : index
    %4 = vector.load %arg3[%c0_3, %c0_4] : memref<1x256xf32, #tpu.memory_space<vmem>>, vector<1x256xf32>
    %5 = vector.broadcast %4 : vector<1x256xf32> to vector<8x256xf32>
    %6 = arith.addf %3, %5 : vector<8x256xf32>
    %cst_5 = arith.constant 0.000000e+00 : f32
    %7 = vector.broadcast %cst_5 : f32 to vector<8x256xf32>
    %8 = arith.maximumf %6, %7 : vector<8x256xf32>
    %9 = arith.truncf %8 : vector<8x256xf32> to vector<8x256xbf16>
    %c0_6 = arith.constant 0 : index
    %c0_7 = arith.constant 0 : index
    %10 = vector.load %arg4[%c0_6, %c0_7] : memref<256x256xbf16, #tpu.memory_space<vmem>>, vector<256x256xbf16>
    %cst_8 = arith.constant dense<0.000000e+00> : vector<8x256xf32>
    %11 = tpu.matmul %9, %10, %cst_8 {dimension_numbers = #tpu.dot_dimension_numbers<[1], [0], [0], [1], [0, 0, 1, 1], [], []>} : vector<8x256xbf16>, vector<256x256xbf16>, vector<8x256xf32> -> vector<8x256xf32>
    %c0_9 = arith.constant 0 : index
    %c0_10 = arith.constant 0 : index
    %12 = vector.load %arg5[%c0_9, %c0_10] : memref<1x256xf32, #tpu.memory_space<vmem>>, vector<1x256xf32>
    %13 = vector.broadcast %12 : vector<1x256xf32> to vector<8x256xf32>
    %14 = arith.addf %11, %13 : vector<8x256xf32>
    %cst_11 = arith.constant 0.000000e+00 : f32
    %15 = vector.broadcast %cst_11 : f32 to vector<8x256xf32>
    %16 = arith.maximumf %14, %15 : vector<8x256xf32>
    %17 = arith.truncf %16 : vector<8x256xf32> to vector<8x256xbf16>
    %c0_12 = arith.constant 0 : index
    %c0_13 = arith.constant 0 : index
    %18 = vector.load %arg6[%c0_12, %c0_13] : memref<256x128xbf16, #tpu.memory_space<vmem>>, vector<256x128xbf16>
    %cst_14 = arith.constant dense<0.000000e+00> : vector<8x128xf32>
    %19 = tpu.matmul %17, %18, %cst_14 {dimension_numbers = #tpu.dot_dimension_numbers<[1], [0], [0], [1], [0, 0, 1, 1], [], []>} : vector<8x256xbf16>, vector<256x128xbf16>, vector<8x128xf32> -> vector<8x128xf32>
    %c0_15 = arith.constant 0 : index
    %c0_16 = arith.constant 0 : index
    %20 = vector.load %arg7[%c0_15, %c0_16] : memref<1x128xf32, #tpu.memory_space<vmem>>, vector<1x128xf32>
    %21 = vector.broadcast %20 : vector<1x128xf32> to vector<8x128xf32>
    %22 = arith.addf %19, %21 : vector<8x128xf32>
    %c0_17 = arith.constant 0 : index
    %c0_18 = arith.constant 0 : index
    %23 = vector.load %arg8[%c0_17, %c0_18] : memref<8x128xf32, #tpu.memory_space<vmem>>, vector<8x128xf32>
    tpu.vector_store %arg8[%c0_17, %c0_18], %22 {strides = array<i32>} : memref<8x128xf32, #tpu.memory_space<vmem>>, vector<8x128xf32>,
    return
  }
  func.func @transform_0(%arg0: i32) -> (i32, i32) {
    %c0_i32 = arith.constant 0 : i32
    %c0_i32_0 = arith.constant 0 : i32
    return %arg0, %c0_i32 : i32, i32
  }
  func.func @transform_1(%arg0: i32) -> (i32, i32) {
    %c0_i32 = arith.constant 0 : i32
    %c0_i32_0 = arith.constant 0 : i32
    %c0_i32_1 = arith.constant 0 : i32
    return %c0_i32, %c0_i32_0 : i32, i32
  }
  func.func @transform_2(%arg0: i32) -> (i32, i32) {
    %c0_i32 = arith.constant 0 : i32
    %c0_i32_0 = arith.constant 0 : i32
    %c0_i32_1 = arith.constant 0 : i32
    return %c0_i32, %c0_i32_0 : i32, i32
  }
  func.func @transform_3(%arg0: i32) -> (i32, i32) {
    %c0_i32 = arith.constant 0 : i32
    %c0_i32_0 = arith.constant 0 : i32
    %c0_i32_1 = arith.constant 0 : i32
    return %c0_i32, %c0_i32_0 : i32, i32
  }
  func.func @transform_4(%arg0: i32) -> (i32, i32) {
    %c0_i32 = arith.constant 0 : i32
    %c0_i32_0 = arith.constant 0 : i32
    %c0_i32_1 = arith.constant 0 : i32
    return %c0_i32, %c0_i32_0 : i32, i32
  }
  func.func @transform_5(%arg0: i32) -> (i32, i32) {
    %c0_i32 = arith.constant 0 : i32
    %c0_i32_0 = arith.constant 0 : i32
    %c0_i32_1 = arith.constant 0 : i32
    return %c0_i32, %c0_i32_0 : i32, i32
  }
  func.func @transform_6(%arg0: i32) -> (i32, i32) {
    %c0_i32 = arith.constant 0 : i32
    %c0_i32_0 = arith.constant 0 : i32
    %c0_i32_1 = arith.constant 0 : i32
    return %c0_i32, %c0_i32_0 : i32, i32
  }
  func.func @transform_7(%arg0: i32) -> (i32, i32) {
    %c0_i32 = arith.constant 0 : i32
    %c0_i32_0 = arith.constant 0 : i32
    return %arg0, %c0_i32 : i32, i32
  }
}

</mosaic_0001>

<bundles_post_ra>
// kernel: dnn_forward.1
= control target key start
LH: loop header
LB: loop body
LE: loop exit
PB: predicated region body
PF: predicated region fallthrough
CT: control target
= control target key end

     0   :  { %12 = vsyncpa [#allocation3], 0  ;;  %s1920_s0 = inlined_call_operand.vmem [shape: f32[8,784], index: 0, kind: input, shape index: {}]   ;;  %s1921_s1 = inlined_call_operand.hbm [shape: bf16[784,256], index: 1, kind: input, shape index: {}]   ;;  %s1922_s2 = inlined_call_operand.vmem [shape: f32[1,256], index: 2, kind: input, shape index: {}]   ;;  %s1923_s3 = inlined_call_operand.vmem [shape: bf16[256,256], index: 3, kind: input, shape index: {}]   ;;  %s1924_s4 = inlined_call_operand.vmem [shape: f32[1,256], index: 4, kind: input, shape index: {}]   ;;  %s1925_s5 = inlined_call_operand.hbm [shape: bf16[256,128], index: 5, kind: input, shape index: {}]   ;;  %s1926_s6 = inlined_call_operand.vmem [shape: f32[1,128], index: 6, kind: input, shape index: {}]   ;;  %s1927_s7 = inlined_call_operand.vmem [shape: f32[8,128], index: 7, kind: output, shape index: {}]  }
   0x1   :  { %13 = vsyncpa [#allocation5], 0  ;;  %s1720_s24 = smov [#allocation2]   ;;  %s1672_s28 = scalar_lea.hbm %s1921_s1, 12544 }
   0x2   :  { %s21_s25 = sshll.u32 %s1720_s24, 4  ;;  %p1673_p0 = scmp.ne.s32.totalorder %s1921_s1, %s1672_s28  ;;  %s22_s25 = int_to_ptr.vmem [resolvable:$true] %s21_s25 }
   0x3   :  { %p1676_p1 = scmp.lt.u32.totalorder %s1672_s28, %s1921_s1 }
   0x5   :  { %p1678_p2 = pnand %p1676_p1, %p1673_p0 }
   0x7   :  { %1681 = shalt.err (!%p1678_p2)
}
   0x8   :  { %s1682_s10 = scalar_lea.vmem %s22_s25, 12544  ;;  %p1687_p4 = scmp.lt.s32.totalorder %s22_s25, %s22_s25 }
   0x9   :  { %p1683_p3 = scmp.ne.s32.totalorder %s22_s25, %s1682_s10  ;;  %p1688_p5 = scmp.lt.s32.totalorder %s1682_s10, %s1682_s10 }
   0xb   :  { %p1689_p6 = por %p1688_p5, %p1687_p4 }
   0xd   :  { %p1690_p7 = pnand %p1689_p6, %p1683_p3 }
   0xf   :  { %1693 = shalt.err (!%p1690_p7)
}
  0x10   :  { %s1721_s11 = smov 128   ;;  %s1722_s12 = smov 8  }
  0x11   :  { %27 = dma.hbm_to_vmem [thread:$0]  %s1921_s1, 12544, %s22_s25, [#allocation3], %s1721_s11, %s1721_s11, %s1722_s12  }
  0x12   :  { %s1723_s15 = smov [#allocation4]   ;;  %s1694_s19 = scalar_lea.hbm %s1925_s5, 2048 }
  0x13   :  { %s39_s16 = sshll.u32 %s1723_s15, 4  ;;  %p1695_p8 = scmp.ne.s32.totalorder %s1925_s5, %s1694_s19  ;;  %s40_s16 = int_to_ptr.vmem [resolvable:$true] %s39_s16 }
  0x14   :  { %p1698_p9 = scmp.lt.u32.totalorder %s1694_s19, %s1925_s5 }
  0x16   :  { %p1700_p10 = pnand %p1698_p9, %p1695_p8 }
  0x18   :  { %1703 = shalt.err (!%p1700_p10)
}
  0x19   :  { %s1704_s24 = scalar_lea.vmem %s40_s16, 2048  ;;  %p1709_p12 = scmp.lt.s32.totalorder %s40_s16, %s40_s16 }
  0x1a   :  { %p1705_p11 = scmp.ne.s32.totalorder %s40_s16, %s1704_s24  ;;  %p1710_p13 = scmp.lt.s32.totalorder %s1704_s24, %s1704_s24 }
  0x1c   :  { %p1711_p0 = por %p1710_p13, %p1709_p12 }
  0x1e   :  { %p1712_p1 = pnand %p1711_p0, %p1705_p11 }
  0x20   :  { %1715 = shalt.err (!%p1712_p1)
}
  0x21   :  { %s1724_s1 = smov 64   ;;  %s1725_s25 = smov 4  }
  0x22   :  { %45 = dma.hbm_to_vmem [thread:$0]  %s1925_s5, 2048, %s40_s16, [#allocation5], %s1724_s1, %s1724_s1, %s1725_s25  }
  0x23   :  { %1716 = dma.done.wait [#allocation3], 12544  }
  0x24   :  { %1717 = vsyncadd [#allocation3], 4294954752 }
  0x25   :  { %1718 = dma.done.wait [#allocation5], 2048  }
  0x26   :  { %1719 = vsyncadd [#allocation5], 4294965248  ;;  %v1461_v0 = vld [vmem:[#allocation2 + $0x104] ss:$8 sps:$4 sm:$0xff]   ;;  %v1463_v1 = vld [vmem:[#allocation2 + $0x100] ss:$8 sps:$4 sm:$0xff]  }
  0x27   :  { %714 = vmatprep.subr.bf16.mxu0 %v1461_v0  ;;  %v1464_v2 = vld [vmem:[#allocation2 + $0x114] ss:$8 sps:$4 sm:$0xff]   ;;  %v1466_v3 = vld [vmem:[#allocation2 + $0x110] ss:$8 sps:$4 sm:$0xff]   ;;  %v1467_v4 = vld [vmem:[#allocation2 + $0x124] ss:$8 sps:$4 sm:$0xff]  }
  0x28   :  { %715 = vmatpush1.bf16.msra.mxu0 %v1463_v1  ;;  %v1469_v5 = vld [vmem:[#allocation2 + $0x120] ss:$8 sps:$4 sm:$0xff]   ;;  %v1470_v6 = vld [vmem:[#allocation2 + $0x134] ss:$8 sps:$4 sm:$0xff]   ;;  %v1472_v7 = vld [vmem:[#allocation2 + $0x130] ss:$8 sps:$4 sm:$0xff]  }
  0x29   :  { %716 = vmatprep.subr.bf16.mxu0 %v1464_v2  ;;  %v1473_v8 = vld [vmem:[#allocation2 + $0x144] ss:$8 sps:$4 sm:$0xff]   ;;  %v1475_v9 = vld [vmem:[#allocation2 + $0x140] ss:$8 sps:$4 sm:$0xff]   ;;  %v1476_v10 = vld [vmem:[#allocation2 + $0x154] ss:$8 sps:$4 sm:$0xff]  }
  0x2a   :  { %v1478_v11 = vld [vmem:[#allocation2 + $0x150] ss:$8 sps:$4 sm:$0xff]   ;;  %v1479_v12 = vld [vmem:[#allocation2 + $0x164] ss:$8 sps:$4 sm:$0xff]   ;;  %v1481_v15 = vld [vmem:[#allocation2 + $0x160] ss:$8 sps:$4 sm:$0xff]  }
  0x2b   :  { %v58_v13 = vld [vmem:[%s1920_s0 + $0x18] sm:$0xff]  ;;  %v1515_v17 = vld [vmem:[#allocation2 + $0x4] ss:$8 sps:$4 sm:$0xff]   ;;  %v1520_v20 = vld [vmem:[#allocation2] ss:$8 sps:$4 sm:$0xff]   ;;  %vm669_vm0 = vcmask 130048  }
  0x2c   :  { %717 = vmatpush1.bf16.msra.mxu0 %v1466_v3  ;;  %v65_v14 = vpack.c.bf16 %v58_v13, %v58_v13  ;;  %v1482_v16 = vld [vmem:[#allocation2 + $0x174] ss:$8 sps:$4 sm:$0xff]   ;;  %v1484_v18 = vld [vmem:[#allocation2 + $0x170] ss:$8 sps:$4 sm:$0xff]   ;;  %v1485_v19 = vld [vmem:[#allocation2 + $0x184] ss:$8 sps:$4 sm:$0xff]   ;;  %673 = vmatprep.subr.bf16.mxu1 %v1515_v17 }
  0x2d   :  { %718 = vmatprep.subr.bf16.mxu0 %v1467_v4  ;;  %v1521_v21 = vld [vmem:[#allocation2 + $0x14] ss:$8 sps:$4 sm:$0xff]   ;;  %674 = vmatpush1.bf16.msra.mxu1 %v1520_v20  ;;  %v1526_v22 = vld [vmem:[#allocation2 + $0x10] ss:$8 sps:$4 sm:$0xff]   ;;  %v1527_v23 = vld [vmem:[#allocation2 + $0x24] ss:$8 sps:$4 sm:$0xff]  }
  0x2e   :  { %746 = vmatprep.mubr.bf16.mxu0 %v65_v14  ;;  %675 = vmatprep.subr.bf16.mxu1 %v1521_v21  ;;  %v1487_v24 = vld [vmem:[#allocation2 + $0x180] ss:$8 sps:$4 sm:$0xff]   ;;  %v1488_v25 = vld [vmem:[#allocation2 + $0x194] ss:$8 sps:$4 sm:$0xff]   ;;  %v1490_v28 = vld [vmem:[#allocation2 + $0x190] ss:$8 sps:$4 sm:$0xff]  }
  0x2f   :  { %v1532_v26 = vld [vmem:[#allocation2 + $0x20] ss:$8 sps:$4 sm:$0xff]   ;;  %v1533_v27 = vld [vmem:[#allocation2 + $0x34] ss:$8 sps:$4 sm:$0xff]   ;;  %v1491_v29 = vld [vmem:[#allocation2 + $0x1a4] ss:$8 sps:$4 sm:$0xff]  }
  0x30   :  { %719 = vmatpush1.bf16.msra.mxu0 %v1469_v5  ;;  %v1538_v30 = vld [vmem:[#allocation2 + $0x30] ss:$8 sps:$4 sm:$0xff]   ;;  %v1539_v31 = vld [vmem:[#allocation2 + $0x44] ss:$8 sps:$4 sm:$0xff]   ;;  %v1493_v32 = vld [vmem:[#allocation2 + $0x1a0] ss:$8 sps:$4 sm:$0xff]  }
  0x31   :  { %720 = vmatprep.subr.bf16.mxu0 %v1470_v6  ;;  %676 = vmatpush1.bf16.msra.mxu1 %v1526_v22  ;;  %v1494_v33 = vld [vmem:[#allocation2 + $0x1b4] ss:$8 sps:$4 sm:$0xff]   ;;  %v1544_v34 = vld [vmem:[#allocation2 + $0x40] ss:$8 sps:$4 sm:$0xff]   ;;  %v1496_v36 = vld [vmem:[#allocation2 + $0x1b0] ss:$8 sps:$4 sm:$0xff]  }
  0x32   :  { %677 = vmatprep.subr.bf16.mxu1 %v1527_v23  ;;  %v1545_v35 = vld [vmem:[#allocation2 + $0x54] ss:$8 sps:$4 sm:$0xff]   ;;  %v1497_v37 = vld [vmem:[#allocation2 + $0x1c4] ss:$8 sps:$4 sm:$0xff]   ;;  %v1550_v38 = vld [vmem:[#allocation2 + $0x50] ss:$8 sps:$4 sm:$0xff]  }
  0x33   :  { %v1551_v39 = vld [vmem:[#allocation2 + $0x64] ss:$8 sps:$4 sm:$0xff]   ;;  %v1499_v40 = vld [vmem:[#allocation2 + $0x1c0] ss:$8 sps:$4 sm:$0xff]   ;;  %v1500_v41 = vld [vmem:[#allocation2 + $0x1d4] ss:$8 sps:$4 sm:$0xff]  }
  0x34   :  { %721 = vmatpush1.bf16.msra.mxu0 %v1472_v7  ;;  %v1556_v42 = vld [vmem:[#allocation2 + $0x60] ss:$8 sps:$4 sm:$0xff]   ;;  %v1557_v43 = vld [vmem:[#allocation2 + $0x74] ss:$8 sps:$4 sm:$0xff]   ;;  %v1502_v44 = vld [vmem:[#allocation2 + $0x1d0] ss:$8 sps:$4 sm:$0xff]  }
  0x35   :  { %722 = vmatprep.subr.bf16.mxu0 %v1473_v8  ;;  %678 = vmatpush1.bf16.msra.mxu1 %v1532_v26  ;;  %v1503_v45 = vld [vmem:[#allocation2 + $0x1e4] ss:$8 sps:$4 sm:$0xff]   ;;  %v1562_v46 = vld [vmem:[#allocation2 + $0x70] ss:$8 sps:$4 sm:$0xff]   ;;  %v1505_v48 = vld [vmem:[#allocation2 + $0x1e0] ss:$8 sps:$4 sm:$0xff]  }
  0x36   :  { %679 = vmatprep.subr.bf16.mxu1 %v1533_v27  ;;  %v1563_v47 = vld [vmem:[#allocation2 + $0x84] ss:$8 sps:$4 sm:$0xff]   ;;  %v1506_v49 = vld [vmem:[#allocation2 + $0x1f4] ss:$8 sps:$4 sm:$0xff]   ;;  %v1568_v50 = vld [vmem:[#allocation2 + $0x80] ss:$8 sps:$4 sm:$0xff]  }
  0x37   :  { %v1508_v51 = vld [vmem:[#allocation2 + $0x1f0] ss:$8 sps:$4 sm:$0xff]   ;;  %v1569_v52 = vld [vmem:[#allocation2 + $0x94] ss:$8 sps:$4 sm:$0xff]   ;;  %v1511_v54 = vld [vmem:[#allocation2 + $0x204] ss:$8 sps:$4 sm:$0xff]  }
  0x38   :  { %723 = vmatpush1.bf16.msra.mxu0 %v1475_v9  ;;  %v57_v53 = vld [vmem:[%s1920_s0 + $0x10] sm:$0xff]  ;;  %v1575_v56 = vld [vmem:[#allocation2 + $0xa4] ss:$8 sps:$4 sm:$0xff]   ;;  %v1509_v59 = vld [vmem:[#allocation2 + $0x200] ss:$8 sps:$4 sm:$0xff]  }
  0x39   :  { %724 = vmatprep.subr.bf16.mxu0 %v1476_v10  ;;  %680 = vmatpush1.bf16.msra.mxu1 %v1538_v30  ;;  %v1574_v55 = vld [vmem:[#allocation2 + $0x90] ss:$8 sps:$4 sm:$0xff]   ;;  %v64_v57 = vpack.c.bf16 %v57_v53, %v57_v53  ;;  %v60_v58 = vld [vmem:[%s1920_s0 + $0x28] sm:$0xff]  ;;  %v1514_v61 = vld [vmem:[#allocation2 + $0x214] ss:$8 sps:$4 sm:$0xff]  }
  0x3a   :  { %681 = vmatprep.subr.bf16.mxu1 %v1539_v31  ;;  %v67_v60 = vpack.c.bf16 %v60_v58, %v60_v58  ;;  %v1580_v62 = vld [vmem:[#allocation2 + $0xa0] ss:$8 sps:$4 sm:$0xff]   ;;  %v1581_v63 = vld [vmem:[#allocation2 + $0xb4] ss:$8 sps:$4 sm:$0xff]   ;;  %v1512_v1 = vld [vmem:[#allocation2 + $0x210] ss:$8 sps:$4 sm:$0xff]  }
  0x3b   :  { %v56_v0 = vld [vmem:[%s1920_s0 + $0x8] sm:$0xff]  ;;  %v1586_v4 = vld [vmem:[#allocation2 + $0xb0] ss:$8 sps:$4 sm:$0xff]   ;;  %v1525_v7 = vld [vmem:[#allocation2 + $0x234] ss:$8 sps:$4 sm:$0xff]  }
  0x3c   :  { %725 = vmatpush1.bf16.msra.mxu0 %v1478_v11  ;;  %v63_v2 = vpack.c.bf16 %v56_v0, %v56_v0  ;;  %v1519_v3 = vld [vmem:[#allocation2 + $0x224] ss:$8 sps:$4 sm:$0xff]   ;;  %v1517_v6 = vld [vmem:[#allocation2 + $0x220] ss:$8 sps:$4 sm:$0xff]   ;;  %v1593_v9 = vld [vmem:[#allocation2 + $0xd4] ss:$8 sps:$4 sm:$0xff]  }
  0x3d   :  { %726 = vmatprep.subr.bf16.mxu0 %v1479_v12  ;;  %682 = vmatpush1.bf16.msra.mxu1 %v1544_v34  ;;  %v1587_v5 = vld [vmem:[#allocation2 + $0xc4] ss:$8 sps:$4 sm:$0xff]   ;;  %v1592_v8 = vld [vmem:[#allocation2 + $0xc0] ss:$8 sps:$4 sm:$0xff]   ;;  %v1523_v10 = vld [vmem:[#allocation2 + $0x230] ss:$8 sps:$4 sm:$0xff]  }
  0x3e   :  { %683 = vmatprep.subr.bf16.mxu1 %v1545_v35  ;;  %705 = vmatprep.mubr.bf16.mxu1 %v63_v2  ;;  %v1531_v11 = vld [vmem:[#allocation2 + $0x244] ss:$8 sps:$4 sm:$0xff]   ;;  %v1598_v12 = vld [vmem:[#allocation2 + $0xd0] ss:$8 sps:$4 sm:$0xff]   ;;  %v1529_v14 = vld [vmem:[#allocation2 + $0x240] ss:$8 sps:$4 sm:$0xff]  }
  0x3f   :  { %v1599_v13 = vld [vmem:[#allocation2 + $0xe4] ss:$8 sps:$4 sm:$0xff]   ;;  %v1605_v17 = vld [vmem:[#allocation2 + $0xf4] ss:$8 sps:$4 sm:$0xff]   ;;  %v1607_v20 = vld [vmem:[#allocation2 + $0xf0] ss:$8 sps:$4 sm:$0xff]  }
  0x40   :  { %727 = vmatpush1.bf16.msra.mxu0 %v1481_v15  ;;  %v1537_v15 = vld [vmem:[#allocation2 + $0x254] ss:$8 sps:$4 sm:$0xff]   ;;  %v55_v21 = vld [vmem:[%s1920_s0] sm:$0xff]  ;;  %v1611_v30 = vld [vmem:[%s1923_s3 + $0x10] ss:$8 sps:$4 sm:$0xff]  }
  0x41   :  { %728 = vmatprep.subr.bf16.mxu0 %v1482_v16  ;;  %684 = vmatpush1.bf16.msra.mxu1 %v1550_v38  ;;  %v1604_v16 = vld [vmem:[#allocation2 + $0xe0] ss:$8 sps:$4 sm:$0xff]   ;;  %v1610_v23 = vld [vmem:[%s1923_s3 + $0x4] ss:$8 sps:$4 sm:$0xff]   ;;  %v62_v26 = vpack.c.bf16 %v55_v21, %v55_v21  ;;  %v1613_v27 = vld [vmem:[%s1923_s3 + $0x14] ss:$8 sps:$4 sm:$0xff]  }
  0x42   :  { %685 = vmatprep.subr.bf16.mxu1 %v1551_v39  ;;  %v1541_v22 = vld [vmem:[#allocation2 + $0x260] ss:$8 sps:$4 sm:$0xff]   ;;  %v1616_v31 = vld [vmem:[%s1923_s3 + $0x24] ss:$8 sps:$4 sm:$0xff]   ;;  %v1619_v35 = vld [vmem:[%s1923_s3 + $0x34] ss:$8 sps:$4 sm:$0xff]  }
  0x43   :  { %v1614_v34 = vld [vmem:[%s1923_s3 + $0x20] ss:$8 sps:$4 sm:$0xff]   ;;  %v1617_v38 = vld [vmem:[%s1923_s3 + $0x30] ss:$8 sps:$4 sm:$0xff]   ;;  %v1622_v39 = vld [vmem:[%s1923_s3 + $0x44] ss:$8 sps:$4 sm:$0xff]  }
  0x44   :  { %729 = vmatpush1.bf16.msra.mxu0 %v1484_v18  ;;  %v1535_v18 = vld [vmem:[#allocation2 + $0x250] ss:$8 sps:$4 sm:$0xff]   ;;  %v1591_v53 = vld [vmem:[#allocation2 + $0x2e4] ss:$8 sps:$4 sm:$0xff]   ;;  %v1632_v58 = vld [vmem:[%s1923_s3 + $0x80] ss:$8 sps:$4 sm:$0xff]  }
  0x45   :  { %730 = vmatprep.subr.bf16.mxu0 %v1485_v19  ;;  %686 = vmatpush1.bf16.msra.mxu1 %v1556_v42  ;;  %v1543_v19 = vld [vmem:[#allocation2 + $0x264] ss:$8 sps:$4 sm:$0xff]   ;;  %v1620_v42 = vld [vmem:[%s1923_s3 + $0x40] ss:$8 sps:$4 sm:$0xff]  }
  0x46   :  { %687 = vmatprep.subr.bf16.mxu1 %v1557_v43  ;;  %v1625_v43 = vld [vmem:[%s1923_s3 + $0x54] ss:$8 sps:$4 sm:$0xff]   ;;  %v1601_v2 = vld [vmem:[#allocation2 + $0x300] ss:$8 sps:$4 sm:$0xff]  }
  0x48   :  { %731 = vmatpush1.bf16.msra.mxu0 %v1487_v24  ;;  %v1549_v24 = vld [vmem:[#allocation2 + $0x274] ss:$8 sps:$4 sm:$0xff]  }
  0x49   :  { %732 = vmatprep.subr.bf16.mxu0 %v1488_v25  ;;  %688 = vmatpush1.bf16.msra.mxu1 %v1562_v46  ;;  %v1608_v25 = vld [vmem:[%s1923_s3] ss:$8 sps:$4 sm:$0xff]   ;;  %v1623_v46 = vld [vmem:[%s1923_s3 + $0x50] ss:$8 sps:$4 sm:$0xff]  }
  0x4a   :  { %689 = vmatprep.subr.bf16.mxu1 %v1563_v47  ;;  %v1628_v47 = vld [vmem:[%s1923_s3 + $0x64] ss:$8 sps:$4 sm:$0xff]  }
  0x4c   :  { %733 = vmatpush1.bf16.msra.mxu0 %v1490_v28  ;;  %v1547_v28 = vld [vmem:[#allocation2 + $0x270] ss:$8 sps:$4 sm:$0xff]  }
  0x4d   :  { %734 = vmatprep.subr.bf16.mxu0 %v1491_v29  ;;  %690 = vmatpush1.bf16.msra.mxu1 %v1568_v50  ;;  %v1555_v29 = vld [vmem:[#allocation2 + $0x284] ss:$8 sps:$4 sm:$0xff]   ;;  %v1626_v50 = vld [vmem:[%s1923_s3 + $0x60] ss:$8 sps:$4 sm:$0xff]  }
  0x4e   :  { %691 = vmatprep.subr.bf16.mxu1 %v1569_v52  ;;  %v1583_v52 = vld [vmem:[#allocation2 + $0x2d0] ss:$8 sps:$4 sm:$0xff]  }
  0x50   :  { %735 = vmatpush1.bf16.msra.mxu0 %v1493_v32  ;;  %v1553_v32 = vld [vmem:[#allocation2 + $0x280] ss:$8 sps:$4 sm:$0xff]  }
  0x51   :  { %736 = vmatprep.subr.bf16.mxu0 %v1494_v33  ;;  %692 = vmatpush1.bf16.msra.mxu1 %v1574_v55  ;;  %v1561_v33 = vld [vmem:[#allocation2 + $0x294] ss:$8 sps:$4 sm:$0xff]   ;;  %v1634_v55 = vld [vmem:[%s1923_s3 + $0x84] ss:$8 sps:$4 sm:$0xff]  }
  0x52   :  { %693 = vmatprep.subr.bf16.mxu1 %v1575_v56  ;;  %v1589_v56 = vld [vmem:[#allocation2 + $0x2e0] ss:$8 sps:$4 sm:$0xff]  }
  0x54   :  { %737 = vmatpush1.bf16.msra.mxu0 %v1496_v36  ;;  %v1559_v36 = vld [vmem:[#allocation2 + $0x290] ss:$8 sps:$4 sm:$0xff]  }
  0x55   :  { %738 = vmatprep.subr.bf16.mxu0 %v1497_v37  ;;  %694 = vmatpush1.bf16.msra.mxu1 %v1580_v62  ;;  %v1567_v37 = vld [vmem:[#allocation2 + $0x2a4] ss:$8 sps:$4 sm:$0xff]  }
  0x56   :  { %695 = vmatprep.subr.bf16.mxu1 %v1581_v63  ;;  %v1603_v62 = vld [vmem:[#allocation2 + $0x304] ss:$8 sps:$4 sm:$0xff]   ;;  %v1635_v63 = vld [vmem:[%s1923_s3 + $0x90] ss:$8 sps:$4 sm:$0xff]  }
  0x58   :  { %739 = vmatpush1.bf16.msra.mxu0 %v1499_v40  ;;  %v1565_v40 = vld [vmem:[#allocation2 + $0x2a0] ss:$8 sps:$4 sm:$0xff]  }
  0x59   :  { %740 = vmatprep.subr.bf16.mxu0 %v1500_v41  ;;  %696 = vmatpush1.bf16.msra.mxu1 %v1586_v4  ;;  %v1573_v41 = vld [vmem:[#allocation2 + $0x2b4] ss:$8 sps:$4 sm:$0xff]  }
  0x5a   :  { %697 = vmatprep.subr.bf16.mxu1 %v1587_v5  ;;  %v1643_v4 = vld [vmem:[%s1923_s3 + $0xb4] ss:$8 sps:$4 sm:$0xff]   ;;  %v1726_v5 = vmov 0  }
  0x5c   :  { %741 = vmatpush1.bf16.msra.mxu0 %v1502_v44  ;;  %v1571_v44 = vld [vmem:[#allocation2 + $0x2b0] ss:$8 sps:$4 sm:$0xff]  }
  0x5d   :  { %742 = vmatprep.subr.bf16.mxu0 %v1503_v45  ;;  %698 = vmatpush1.bf16.msra.mxu1 %v1592_v8  ;;  %v1579_v45 = vld [vmem:[#allocation2 + $0x2c4] ss:$8 sps:$4 sm:$0xff]   ;;  %v61_v8 = vld [vmem:[%s1920_s0 + $0x30] sm:$0xff] }
  0x5e   :  { %699 = vmatprep.subr.bf16.mxu1 %v1593_v9  ;;  %v1644_v9 = vld [vmem:[%s1923_s3 + $0xc0] ss:$8 sps:$4 sm:$0xff]  }
  0x60   :  { %743 = vmatpush1.bf16.msra.mxu0 %v1505_v48  ;;  %v1577_v48 = vld [vmem:[#allocation2 + $0x2c0] ss:$8 sps:$4 sm:$0xff]  }
  0x61   :  { %744 = vmatprep.subr.bf16.mxu0 %v1506_v49  ;;  %700 = vmatpush1.bf16.msra.mxu1 %v1598_v12  ;;  %v1585_v49 = vld [vmem:[#allocation2 + $0x2d4] ss:$8 sps:$4 sm:$0xff]  }
  0x62   :  { %701 = vmatprep.subr.bf16.mxu1 %v1599_v13  ;;  %v1649_v12 = vld [vmem:[%s1923_s3 + $0xd4] ss:$8 sps:$4 sm:$0xff]   ;;  %v1652_v13 = vld [vmem:[%s1923_s3 + $0xe4] ss:$8 sps:$4 sm:$0xff]  }
  0x64   :  { %745 = vmatpush1.bf16.msra.mxu0 %v1508_v51  ;;  %v1631_v51 = vld [vmem:[%s1923_s3 + $0x74] ss:$8 sps:$4 sm:$0xff]  }
  0x65   :  { %755 = vmatprep.subr.bf16.mxu0 %v1511_v54  ;;  %702 = vmatpush1.bf16.msra.mxu1 %v1604_v16  ;;  %v1629_v54 = vld [vmem:[%s1923_s3 + $0x70] ss:$8 sps:$4 sm:$0xff]  }
  0x66   :  { %703 = vmatprep.subr.bf16.mxu1 %v1605_v17  ;;  %v1653_v16 = vld [vmem:[%s1923_s3 + $0xf0] ss:$8 sps:$4 sm:$0xff]  }
  0x67   :  { %747 = vmatmul.mubr.bf16.vlgmr.msra.gmra.mrb[0].mxu0 %v64_v57  ;;  %v1597_v57 = vld [vmem:[#allocation2 + $0x2f4] ss:$8 sps:$4 sm:$0xff]  }
  0x68   :  { %756 = vmatpush1.bf16.msra.mxu0 %v1509_v59  ;;  %787 = vmatprep.mubr.bf16.mxu0 %v67_v60  ;;  %v1637_v59 = vld [vmem:[%s1923_s3 + $0x94] ss:$8 sps:$4 sm:$0xff]   ;;  %v1595_v60 = vld [vmem:[#allocation2 + $0x2f0] ss:$8 sps:$4 sm:$0xff]  }
  0x69   :  { %757 = vmatprep.subr.bf16.mxu0 %v1514_v61  ;;  %704 = vmatpush1.bf16.msra.mxu1 %v1607_v20  ;;  %v59_v61 = vld [vmem:[%s1920_s0 + $0x20] sm:$0xff]  ;;  %v1656_v17 = vld [vmem:[#allocation4 + $0x40] sm:$0xff]  }
  0x6a   :  { %1045 = vmatprep.subr.bf16.mxu1 %v1610_v23  ;;  %v66_v0 = vpack.c.bf16 %v59_v61, %v59_v61 }
  0x6c   :  { %758 = vmatpush1.bf16.msra.mxu0 %v1512_v1  ;;  %706 = vmatmul.mubr.bf16.vlgmr.msra.gmra.mrb[0].mxu1 %v62_v26  ;;  %v1640_v1 = vld [vmem:[%s1923_s3 + $0xa4] ss:$8 sps:$4 sm:$0xff]  }
  0x6d   :  { %759 = vmatprep.subr.bf16.mxu0 %v1519_v3  ;;  %1046 = vmatpush1.bf16.msra.mxu1 %v1608_v25  ;;  %v1638_v3 = vld [vmem:[%s1923_s3 + $0xa0] ss:$8 sps:$4 sm:$0xff]  }
  0x6e   :  { %1047 = vmatprep.subr.bf16.mxu1 %v1613_v27  ;;  %v167_v25 = vld [vmem:[%s1922_s2] sm:$0x3] }
  0x70   :  { %760 = vmatpush1.bf16.msra.mxu0 %v1517_v6  ;;  %v1641_v6 = vld [vmem:[%s1923_s3 + $0xb0] ss:$8 sps:$4 sm:$0xff]  }
  0x71   :  { %761 = vmatprep.subr.bf16.mxu0 %v1525_v7  ;;  %1048 = vmatpush1.bf16.msra.mxu1 %v1611_v30  ;;  %v1646_v7 = vld [vmem:[%s1923_s3 + $0xc4] ss:$8 sps:$4 sm:$0xff]  }
  0x72   :  { %1049 = vmatprep.subr.bf16.mxu1 %v1616_v31 }
  0x74   :  { %762 = vmatpush1.bf16.msra.mxu0 %v1523_v10  ;;  %v68_v10 = vpack.c.bf16 %v61_v8, %v61_v8 }
  0x75   :  { %763 = vmatprep.subr.bf16.mxu0 %v1531_v11  ;;  %1050 = vmatpush1.bf16.msra.mxu1 %v1614_v34  ;;  %v1647_v11 = vld [vmem:[%s1923_s3 + $0xd0] ss:$8 sps:$4 sm:$0xff]  }
  0x76   :  { %1051 = vmatprep.subr.bf16.mxu1 %v1619_v35 }
  0x78   :  { %764 = vmatpush1.bf16.msra.mxu0 %v1529_v14  ;;  %v1650_v14 = vld [vmem:[%s1923_s3 + $0xe0] ss:$8 sps:$4 sm:$0xff]  }
  0x79   :  { %765 = vmatprep.subr.bf16.mxu0 %v1537_v15  ;;  %1052 = vmatpush1.bf16.msra.mxu1 %v1617_v38  ;;  %v1655_v15 = vld [vmem:[%s1923_s3 + $0xf4] ss:$8 sps:$4 sm:$0xff]  }
  0x7a   :  { %1053 = vmatprep.subr.bf16.mxu1 %v1622_v39 }
  0x7c   :  { %766 = vmatpush1.bf16.msra.mxu0 %v1535_v18 }
  0x7d   :  { %767 = vmatprep.subr.bf16.mxu0 %v1543_v19  ;;  %1054 = vmatpush1.bf16.msra.mxu1 %v1620_v42  ;;  %v1658_v42 = vld [vmem:[#allocation4 + $0x48] sm:$0xff]  }
  0x7e   :  { %1055 = vmatprep.subr.bf16.mxu1 %v1625_v43  ;;  %v1659_v43 = vld [vmem:[#allocation4 + $0x8] sm:$0xff]  }
  0x80   :  { %768 = vmatpush1.bf16.msra.mxu0 %v1541_v22  ;;  %v169_v22 = vlaneseq }
  0x81   :  { %769 = vmatprep.subr.bf16.mxu0 %v1549_v24  ;;  %1056 = vmatpush1.bf16.msra.mxu1 %v1623_v46  ;;  %v1662_v46 = vld [vmem:[#allocation4 + $0x58] sm:$0xff]  }
  0x82   :  { %1057 = vmatprep.subr.bf16.mxu1 %v1628_v47  ;;  %v170_v23 = vshrl.u32 %v169_v22, 7  ;;  %v1663_v47 = vld [vmem:[#allocation4 + $0x18] sm:$0xff]  }
  0x84   :  { %770 = vmatpush1.bf16.msra.mxu0 %v1547_v28  ;;  %v171_v24 = vsub.s32 0, %v170_v23  ;;  %v175_v26 = vsub.s32 1, %v170_v23 }
  0x85   :  { %771 = vmatprep.subr.bf16.mxu0 %v1555_v29  ;;  %1058 = vmatpush1.bf16.msra.mxu1 %v1626_v50  ;;  %v1666_v50 = vld [vmem:[#allocation4 + $0x68] sm:$0xff]  }
  0x86   :  { %1059 = vmatprep.subr.bf16.mxu1 %v1631_v51  ;;  %v172_v27 = vrot.slane %v167_v25, %v171_v24  ;;  %v176_v28 = vrot.slane %v167_v25, %v175_v26  ;;  %v1667_v51 = vld [vmem:[#allocation4 + $0x28] sm:$0xff]  }
  0x88   :  { %772 = vmatpush1.bf16.msra.mxu0 %v1553_v32 }
  0x89   :  { %773 = vmatprep.subr.bf16.mxu0 %v1561_v33  ;;  %1060 = vmatpush1.bf16.msra.mxu1 %v1629_v54  ;;  %v1670_v54 = vld [vmem:[#allocation4 + $0x78] sm:$0xff]  }
  0x8a   :  { %1061 = vmatprep.subr.bf16.mxu1 %v1634_v55  ;;  %v1671_v55 = vld [vmem:[#allocation4 + $0x38] sm:$0xff]  }
  0x8c   :  { %774 = vmatpush1.bf16.msra.mxu0 %v1559_v36 }
  0x8d   :  { %775 = vmatprep.subr.bf16.mxu0 %v1567_v37  ;;  %1062 = vmatpush1.bf16.msra.mxu1 %v1632_v58 }
  0x8e   :  { %1063 = vmatprep.subr.bf16.mxu1 %v1637_v59 }
  0x90   :  { %776 = vmatpush1.bf16.msra.mxu0 %v1565_v40  ;;  %v1657_v40 = vld [vmem:[#allocation4] sm:$0xff]  }
  0x91   :  { %777 = vmatprep.subr.bf16.mxu0 %v1573_v41  ;;  %1064 = vmatpush1.bf16.msra.mxu1 %v1635_v63 }
  0x92   :  { %1065 = vmatprep.subr.bf16.mxu1 %v1640_v1 }
  0x94   :  { %778 = vmatpush1.bf16.msra.mxu0 %v1571_v44  ;;  %v1660_v44 = vld [vmem:[#allocation4 + $0x50] sm:$0xff]  }
  0x95   :  { %779 = vmatprep.subr.bf16.mxu0 %v1579_v45  ;;  %1066 = vmatpush1.bf16.msra.mxu1 %v1638_v3  ;;  %v1661_v45 = vld [vmem:[#allocation4 + $0x10] sm:$0xff]  }
  0x96   :  { %1067 = vmatprep.subr.bf16.mxu1 %v1643_v4 }
  0x98   :  { %780 = vmatpush1.bf16.msra.mxu0 %v1577_v48  ;;  %v1664_v48 = vld [vmem:[#allocation4 + $0x60] sm:$0xff]  }
  0x99   :  { %781 = vmatprep.subr.bf16.mxu0 %v1585_v49  ;;  %1068 = vmatpush1.bf16.msra.mxu1 %v1641_v6  ;;  %v1665_v49 = vld [vmem:[#allocation4 + $0x20] sm:$0xff]   ;;  %v1403_v6 = vld [vmem:[%s1926_s6] ss:$0 sm:$0xff] }
  0x9a   :  { %1069 = vmatprep.subr.bf16.mxu1 %v1646_v7 }
  0x9c   :  { %782 = vmatpush1.bf16.msra.mxu0 %v1583_v52  ;;  %v1668_v52 = vld [vmem:[#allocation4 + $0x70] sm:$0xff]  }
  0x9d   :  { %783 = vmatprep.subr.bf16.mxu0 %v1591_v53  ;;  %1070 = vmatpush1.bf16.msra.mxu1 %v1644_v9  ;;  %v1669_v53 = vld [vmem:[#allocation4 + $0x30] sm:$0xff]  }
  0x9e   :  { %1071 = vmatprep.subr.bf16.mxu1 %v1649_v12 }
  0xa0   :  { %784 = vmatpush1.bf16.msra.mxu0 %v1589_v56  ;;  %v873_v56 = vld [vmem:[%s1924_s4] sm:$0x3] }
  0xa1   :  { %785 = vmatprep.subr.bf16.mxu0 %v1597_v57  ;;  %1072 = vmatpush1.bf16.msra.mxu1 %v1647_v11  ;;  %v878_v57 = vrot.slane %v873_v56, %v171_v24  ;;  %v882_v58 = vrot.slane %v873_v56, %v175_v26 }
  0xa2   :  { %1073 = vmatprep.subr.bf16.mxu1 %v1652_v13 }
  0xa4   :  { %786 = vmatpush1.bf16.msra.mxu0 %v1595_v60 }
  0xa5   :  { %796 = vmatprep.subr.bf16.mxu0 %v1603_v62  ;;  %1074 = vmatpush1.bf16.msra.mxu1 %v1650_v14 }
  0xa6   :  { %1075 = vmatprep.subr.bf16.mxu1 %v1655_v15 }
  0xa7   :  { %788 = vmatmul.mubr.bf16.vlgmr.msra.gmra.mrb[0].mxu0 %v66_v0 }
  0xa8   :  { %797 = vmatpush1.bf16.msra.mxu0 %v1601_v2  ;;  %828 = vmatprep.mubr.bf16.mxu0 %v1726_v5 }
  0xa9   :  { %1076 = vmatpush1.bf16.msra.mxu1 %v1653_v16 }
  0xaa   :  { %1420 = vmatprep.subr.bf16.mxu1 %v1656_v17 }
  0xb3   :  { %1370 = vmatmul.mubr.msk.bf16.vlgmr.msra.gmra.mrb[0].mxu0 %vm669_vm0, %v68_v10 }
 0x13f   :  { %v707_v18 = vpop.f32.mrb[0].mxu1 }
 0x140   :  { %v709_v19 = vpop.f32.mrb[1].mxu1  ;;  %v708_v29 = vadd.f32 %v707_v18, %v172_v27 }
 0x141   :  { %v711_v20 = vpop.f32.mrb[2].mxu1  ;;  %v710_v30 = vadd.f32 %v709_v19, %v176_v28 }
 0x142   :  { %v712_v21 = vpop.f32.mrb[3].mxu1 }
 0x186   :  { %v830_v31 = vpop.f32.mrb[0].mxu0 }
 0x187   :  { %v1443_v32 = vadd.f32 %v830_v31, %v708_v29  ;;  %v832_v33 = vpop.f32.mrb[1].mxu0 }
 0x188   :  { %v1445_v34 = vadd.f32 %v832_v33, %v710_v30  ;;  %v834_v35 = vpop.f32.mrb[2].mxu0 }
 0x189   :  { %v837_v36 = vmax.f32 %v1443_v32, 0.0  ;;  %v835_v37 = vpop.f32.mrb[3].mxu0 }
 0x18a   :  { %v838_v38 = vmax.f32 %v1445_v34, 0.0 }
 0x18b   :  { %v839_v41 = vpack.c.bf16 %v837_v36, %v837_v36 }
 0x18c   :  { %v840_v39 = vpack.c.bf16 %v838_v38, %v838_v38 }
 0x18e   :  { %1077 = vmatprep.mubr.bf16.mxu1 %v840_v39 }
 0x18f   :  { %1078 = vmatmul.mubr.bf16.vlgmr.msra.gmra.mrb[4].mxu1 %v839_v41 }
 0x190   :  { %1421 = vmatpush3.bf16.msra.mxu1 %v1657_v40 }
 0x191   :  { %1422 = vmatprep.subr.bf16.mxu1 %v1658_v42 }
 0x194   :  { %1423 = vmatpush3.bf16.msra.mxu1 %v1659_v43 }
 0x195   :  { %1424 = vmatprep.subr.bf16.mxu1 %v1660_v44 }
 0x198   :  { %1425 = vmatpush3.bf16.msra.mxu1 %v1661_v45 }
 0x199   :  { %1426 = vmatprep.subr.bf16.mxu1 %v1662_v46 }
 0x19c   :  { %1427 = vmatpush3.bf16.msra.mxu1 %v1663_v47 }
 0x19d   :  { %1428 = vmatprep.subr.bf16.mxu1 %v1664_v48 }
 0x1a0   :  { %1429 = vmatpush3.bf16.msra.mxu1 %v1665_v49 }
 0x1a1   :  { %1430 = vmatprep.subr.bf16.mxu1 %v1666_v50 }
 0x1a4   :  { %1431 = vmatpush3.bf16.msra.mxu1 %v1667_v51 }
 0x1a5   :  { %1432 = vmatprep.subr.bf16.mxu1 %v1668_v52 }
 0x1a8   :  { %1433 = vmatpush3.bf16.msra.mxu1 %v1669_v53 }
 0x1a9   :  { %1434 = vmatprep.subr.bf16.mxu1 %v1670_v54 }
 0x1ac   :  { %1435 = vmatpush3.bf16.msra.mxu1 %v1671_v55 }
 0x262   :  { %v1079_v59 = vpop.f32.mrb[4].mxu1 }
 0x263   :  { %v1080_v60 = vadd.f32 %v1079_v59, %v878_v57  ;;  %v1081_v61 = vpop.f32.mrb[5].mxu1 }
 0x264   :  { %v1082_v62 = vadd.f32 %v1081_v61, %v882_v58  ;;  %v1083_v63 = vpop.f32.mrb[6].mxu1 }
 0x265   :  { %v1086_v0 = vmax.f32 %v1080_v60, 0.0  ;;  %v1084_v1 = vpop.f32.mrb[7].mxu1 }
 0x266   :  { %v1087_v2 = vmax.f32 %v1082_v62, 0.0 }
 0x267   :  { %v1088_v4 = vpack.c.bf16 %v1086_v0, %v1086_v0 }
 0x268   :  { %v1089_v3 = vpack.c.bf16 %v1087_v2, %v1087_v2 }
 0x26a   :  { %1257 = vmatprep.mubr.bf16.mxu1 %v1089_v3 }
 0x26b   :  { %1258 = vmatmul.mubr.bf16.vlgmr.msra.gmra.mrb[8].mxu1 %v1088_v4 }
 0x33e   :  { %v1436_v5 = vpop.f32.mrb[8].mxu1 }
 0x33f   :  { %v1437_v7 = vpop.f32.mrb[9].mxu1 }
 0x340   :  { %v1438_v8 = vadd.f32 %v1437_v7, %v1436_v5  ;;  %v1439_v9 = vpop.f32.mrb[10].mxu1 }
 0x341   :  { %v1440_v10 = vpop.f32.mrb[11].mxu1 }
 0x342   :  { %v1260_v11 = vadd.f32 %v1438_v8, %v1403_v6 }
 0x344   :  { %1265 = vst [vmem:[%s1927_s7] sm:$0xff] %v1260_v11 }
 0x345   :  { %1270 = vsyncpa [#allocation3], 1 }
 0x346   :  { %1271 = vsyncpa [#allocation5], 1 }

</bundles_post_ra>
